<compile_context>
chip_gen: v5e
topology: v5e:2x2
jax: 0.10.0
libtpu: 0.0.40
codegen_flags: <defaults>
</compile_context>

<pallas_src>
import functools

import jax
import jax.numpy as jnp
from jax import lax
from jax.experimental import pallas as pl
from jax.experimental.pallas import tpu as pltpu


def _matmul_noacc_kernel(x_ref, w_ref, o_ref, *, compute_dtype):
    """Single-K-block path: o[tm, tn] = x[tm, K] @ w[tn, K]^T, no scratch."""
    a = x_ref[...]
    b = w_ref[...]
    if compute_dtype is not None:
        a = a.astype(compute_dtype)
        b = b.astype(compute_dtype)
    o_ref[...] = lax.dot_general(
        a, b,
        dimension_numbers=(((1,), (1,)), ((), ())),
        preferred_element_type=jnp.float32,
    ).astype(o_ref.dtype)


def _matmul_acc_kernel(x_ref, w_ref, o_ref, acc_ref, *, compute_dtype):
    """Multi-K-block path: acc[tm, tn] += x[tm, tk] @ w[tn, tk]^T."""
    kk = pl.program_id(2)

    @pl.when(kk == 0)
    def _():
        acc_ref[...] = jnp.zeros_like(acc_ref)

    a = x_ref[...]
    b = w_ref[...]
    if compute_dtype is not None:
        a = a.astype(compute_dtype)
        b = b.astype(compute_dtype)
    acc_ref[...] += lax.dot_general(
        a, b,
        dimension_numbers=(((1,), (1,)), ((), ())),
        preferred_element_type=jnp.float32,
    )

    @pl.when(kk == pl.num_programs(2) - 1)
    def _():
        o_ref[...] = acc_ref[...].astype(o_ref.dtype)


def _round_up(x, q):
    return ((x + q - 1) // q) * q


def _vmem_capacity_bytes():
    """Best-effort query of per-core VMEM; conservative 64 MiB fallback."""
    try:
        info = pltpu.get_tpu_info()
        for attr in ("vmem_capacity_bytes", "vmem_size_bytes", "vmem_bytes"):
            v = getattr(info, attr, None)
            if v:
                return int(v)
    except Exception:
        pass
    return 64 * 1024 * 1024


def embedding_forward(x, w, *, tm=256, tn=512, compute_dtype=jnp.bfloat16):
    """PyTorch `nn.Linear(n_input, n_embed, bias=False)` forward: x @ w.T.

    x: [..., n_input], w: [n_embed, n_input]  ->  [..., n_embed]
    """
    *lead, k = x.shape
    n_embed, k_w = w.shape
    assert k_w == k, "weight inner dim must match x feature dim"

    m = 1
    for d in lead:
        m *= d

    out_dtype = x.dtype
    x_flat = x.reshape(m, k)

    in_bytes = jnp.dtype(x.dtype).itemsize
    out_bytes = jnp.dtype(out_dtype).itemsize
    # Sublane quantum for the M tile depends on the stored dtype (8/16/32 rows).
    sub_q = {4: 8, 2: 16, 1: 32}.get(in_bytes, 8)

    # ---- per-generation VMEM budget ----
    cap = _vmem_capacity_bytes()
    if cap >= 100 * 1024 * 1024:            # v5e / v6e: 128 MiB physical VMEM
        budget_cap = 110 * 1024 * 1024
    else:                                    # v7x: 64 MiB per TensorCore
        budget_cap = min(56 * 1024 * 1024, int(cap * 0.85))
    tile_budget = int(budget_cap * 0.9)      # headroom for compiler scratch

    # ---- M tile (sublane-aligned) ----
    tm = min(_round_up(tm, sub_q), _round_up(m, sub_q))

    # ---- N tile (lane-dense); prefer >= 2 N blocks so v7x megacore can shard
    #      disjoint halves of W along the outer parallel axis ----
    tn_pref = _round_up(tn, 128)
    if n_embed >= 2 * 128:
        tn_pref = min(tn_pref, max(128, ((n_embed // 2) // 128) * 128))
    tn = min(tn_pref, _round_up(n_embed, 128))

    # ---- K tile: chosen last, maximized against the VMEM budget so tk == K
    #      (single reduction block) whenever it fits ----
    fixed = 2 * tm * tn * out_bytes + tm * tn * 4      # out (2 bufs) + f32 acc
    per_k = 2 * (tm + tn) * in_bytes                   # x + w tiles, double-buffered
    tk_max = max(128, ((tile_budget - fixed) // per_k // 128) * 128)
    tk = min(tk_max, _round_up(k, 128))

    # ---- pad to tile multiples (zero padding is numerically inert) ----
    m_pad = _round_up(m, tm)
    n_pad = _round_up(n_embed, tn)
    k_pad = _round_up(k, tk)
    if (m_pad, k_pad) != (m, k):
        x_flat = jnp.pad(x_flat, ((0, m_pad - m), (0, k_pad - k)))
    w_p = w
    if (n_pad, k_pad) != (n_embed, k):
        w_p = jnp.pad(w, ((0, n_pad - n_embed), (0, k_pad - k)))

    mb, nb, kb = m_pad // tm, n_pad // tn, k_pad // tk

    # ---- adaptive loop order: hold the larger operand stationary (read once
    #      from HBM); the smaller operand re-streams ----
    w_stationary = n_embed >= m
    if w_stationary:
        grid = (nb, mb, kb)
        x_spec = pl.BlockSpec((tm, tk), lambda j, i, kk: (i, kk))
        w_spec = pl.BlockSpec((tn, tk), lambda j, i, kk: (j, kk))
        o_spec = pl.BlockSpec((tm, tn), lambda j, i, kk: (i, j))
    else:
        grid = (mb, nb, kb)
        x_spec = pl.BlockSpec((tm, tk), lambda i, j, kk: (i, kk))
        w_spec = pl.BlockSpec((tn, tk), lambda i, j, kk: (j, kk))
        o_spec = pl.BlockSpec((tm, tn), lambda i, j, kk: (i, j))

    if kb == 1:
        kernel = functools.partial(_matmul_noacc_kernel, compute_dtype=compute_dtype)
        scratch_shapes = ()
    else:
        kernel = functools.partial(_matmul_acc_kernel, compute_dtype=compute_dtype)
        scratch_shapes = (pltpu.VMEM((tm, tn), jnp.float32),)

    footprint = per_k * tk + fixed
    vmem_limit = int(min(max(int(1.25 * footprint), 32 * 1024 * 1024), budget_cap))

    cost = pl.CostEstimate(
        flops=2 * m_pad * k_pad * n_pad,
        bytes_accessed=int(m_pad * k_pad * in_bytes
                           + n_pad * k_pad * in_bytes
                           + m_pad * n_pad * out_bytes),
        transcendentals=0,
    )

    out_flat = pl.pallas_call(
        kernel,
        out_shape=jax.ShapeDtypeStruct((m_pad, n_pad), out_dtype),
        grid_spec=pltpu.PrefetchScalarGridSpec(
            num_scalar_prefetch=0,
            grid=grid,
            in_specs=[x_spec, w_spec],
            out_specs=o_spec,
            scratch_shapes=scratch_shapes,
        ),
        compiler_params=pltpu.CompilerParams(
            dimension_semantics=("parallel", "parallel", "arbitrary"),
            vmem_limit_bytes=vmem_limit,
        ),
        cost_estimate=cost,
    )(x_flat, w_p)

    if (m_pad, n_pad) != (m, n_embed):
        out_flat = out_flat[:m, :n_embed]
    return out_flat.reshape(*lead, n_embed)


if __name__ == "__main__":
    # Module config (synthetic, deterministic, small)
    batch, seq = 2, 8
    n_input, n_embed = 128, 256

    key = jax.random.PRNGKey(0)
    kx, kw = jax.random.split(key)

    x = jax.random.normal(kx, (batch, seq, n_input), dtype=jnp.float32)

    # nn.Linear default init: U(-1/sqrt(n_input), 1/sqrt(n_input)), shape (n_embed, n_input)
    bound = 1.0 / jnp.sqrt(jnp.float32(n_input))
    w = jax.random.uniform(
        kw, (n_embed, n_input), dtype=jnp.float32, minval=-bound, maxval=bound
    )

    z = embedding_forward(x, w)
    z = jax.block_until_ready(z)

    assert z.shape == (batch, seq, n_embed)
    assert z.dtype == x.dtype

    # Tight check vs a reference using the same bf16 input quantization
    # (f32 accumulation), and a loose check vs the pure-f32 linear.
    xq = x.astype(jnp.bfloat16).astype(jnp.float32)
    wq = w.astype(jnp.bfloat16).astype(jnp.float32)
    z_ref_q = jnp.einsum("bsk,nk->bsn", xq, wq, precision=lax.Precision.HIGHEST)
    z_ref_f32 = jnp.einsum("bsk,nk->bsn", x, w, precision=lax.Precision.HIGHEST)

    assert jnp.allclose(z, z_ref_q, atol=2e-3, rtol=2e-3)
    assert jnp.allclose(z, z_ref_f32, atol=5e-2, rtol=5e-2)

    print("KERNEL_OK")
</pallas_src>

<mosaic_0001>
module attributes {stable_mosaic.version = 11 : i64} {
  func.func @_matmul_noacc_kernel(%arg0: i32, %arg1: i32, %arg2: i32, %arg3: memref<16x128xf32, #tpu.memory_space<vmem>>, %arg4: memref<128x128xf32, #tpu.memory_space<vmem>>, %arg5: memref<16x128xf32, #tpu.memory_space<vmem>>) attributes {dimension_semantics = [#tpu.dimension_semantics<parallel>, #tpu.dimension_semantics<parallel>, #tpu.dimension_semantics<arbitrary>], iteration_bounds = array<i64: 2, 1, 1>, scalar_prefetch = 0 : i64, scratch_operands = 0 : i64, tpu.core_type = #tpu.core_type<tc>, window_params = [{transform_indices = @transform_0, window_bounds = array<i64: 16, 128>}, {transform_indices = @transform_1, window_bounds = array<i64: 128, 128>}, {transform_indices = @transform_2, window_bounds = array<i64: 16, 128>}]} {
    %c0 = arith.constant 0 : index
    %c0_0 = arith.constant 0 : index
    %0 = vector.load %arg3[%c0, %c0_0] : memref<16x128xf32, #tpu.memory_space<vmem>>, vector<16x128xf32>
    %c0_1 = arith.constant 0 : index
    %c0_2 = arith.constant 0 : index
    %1 = vector.load %arg4[%c0_1, %c0_2] : memref<128x128xf32, #tpu.memory_space<vmem>>, vector<128x128xf32>
    %2 = arith.truncf %0 : vector<16x128xf32> to vector<16x128xbf16>
    %3 = arith.truncf %1 : vector<128x128xf32> to vector<128x128xbf16>
    %cst = arith.constant dense<0.000000e+00> : vector<16x128xf32>
    %4 = tpu.matmul %2, %3, %cst {dimension_numbers = #tpu.dot_dimension_numbers<[1], [1], [0], [0], [0, 0, 1, 0], [], []>} : vector<16x128xbf16>, vector<128x128xbf16>, vector<16x128xf32> -> vector<16x128xf32>
    %c0_3 = arith.constant 0 : index
    %c0_4 = arith.constant 0 : index
    %5 = vector.load %arg5[%c0_3, %c0_4] : memref<16x128xf32, #tpu.memory_space<vmem>>, vector<16x128xf32>
    tpu.vector_store %arg5[%c0_3, %c0_4], %4 {strides = array<i32>} : memref<16x128xf32, #tpu.memory_space<vmem>>, vector<16x128xf32>,
    return
  }
  func.func @transform_0(%arg0: i32, %arg1: i32, %arg2: i32) -> (i32, i32) {
    %c0_i32 = arith.constant 0 : i32
    return %arg1, %arg2 : i32, i32
  }
  func.func @transform_1(%arg0: i32, %arg1: i32, %arg2: i32) -> (i32, i32) {
    %c0_i32 = arith.constant 0 : i32
    return %arg0, %arg2 : i32, i32
  }
  func.func @transform_2(%arg0: i32, %arg1: i32, %arg2: i32) -> (i32, i32) {
    %c0_i32 = arith.constant 0 : i32
    return %arg1, %arg0 : i32, i32
  }
}

</mosaic_0001>

<bundles_post_ra>
// kernel: tpu_custom_call.1
= control target key start
LH: loop header
LB: loop body
LE: loop exit
PB: predicated region body
PF: predicated region fallthrough
CT: control target
= control target key end

     0   :  { %7 = vsyncpa [#allocation3], 0  ;;  %s822_s0 = inlined_call_operand.hbm [shape: f32[16,128], index: 0, kind: input, shape index: {}]   ;;  %s823_s1 = inlined_call_operand.hbm [shape: f32[256,128], index: 1, kind: input, shape index: {}]   ;;  %s824_s2 = inlined_call_operand.hbm [shape: f32[16,256], index: 2, kind: output, shape index: {}]  }
   0x1   :  { %8 = vsyncpa [#allocation6], 0 }
   0x2   :  { %10 = vsyncpa [#allocation6 + $0x1], 0 }
   0x3   :  { %11 = vsyncpa [#allocation4], 0 }
   0x4   :  { %13 = vsyncpa [#allocation4 + $0x1], 0  ;;  %s648_s9 = smov 0   ;;  %s650_s10 = smov 0  }
   0x5   :  { %s652_s11 = smov 0   ;;  %s654_s12 = smov 0  }
   0x6   :  { %s656_s13 = smov 0   ;;  %s658_s14 = smov 0  }
   0x7 LB: > { %s384_s15 = sadd.s32 4294967295, %s625_s14   ;;  %s385_s16 = sadd.s32 4294967294, %s625_s14   ;;  %s625_s14 = sphi %s658_s14, %s19_s14   ;;  %s621_s13 = sphi %s656_s13, %s836_s13   ;;  %s617_s12 = sphi %s654_s12, %s835_s12   ;;  %s613_s11 = sphi %s652_s11, %s834_s11   ;;  %s609_s10 = sphi %s650_s10, %s833_s10   ;;  %s605_s9 = sphi %s648_s9, %s832_s9  }
   0x8   : > { %p88_p0 = scmp.ne.s32.totalorder %s609_s10, %s605_s9  ;;  %p682_p1 = scmp.eq.s32.totalorder %s384_s15, 0 }
   0x9   : > { %p686_p2 = scmp.eq.s32.totalorder %s384_s15, 1  ;;  %p120_p3 = scmp.eq.s32.totalorder %s385_s16, 1 }
   0xa   : > { %p692_p4 = por %p682_p1, %p88_p0  ;;  %p386_p5 = scmp.ge.s32.totalorder %s625_s14, 1 }
   0xb   : > { %p697_p6 = por %p120_p3, %p88_p0  ;;  %p127_p7 = scmp.lt.s32.totalorder %s625_s14, 3 }
   0xc   : > { %s142_s23 = sshll.u32 %s822_s0, 4  ;;  %s627_s25 = smov [#allocation2]   ;;  %s143_s23 = int_to_ptr.hbm [resolvable:$true] %s142_s23 }
   0xd   : > { %p705_p8 = pnand %p386_p5, %p127_p7  ;;  %s144_s26 = sshll.u32 %s627_s25, 4  ;;  %s145_s26 = int_to_ptr.vmem [resolvable:$true] %s144_s26 }
   0xe   : > { %p388_p11 = scmp.ge.s32.totalorder %s625_s14, 2  ;;  %s628_s27 = smov 128  }
   0xf   : > { %p409_p9 = pneg %p705_p8  ;;  %s629_s28 = smov 8  }
  0x10   : > { %s38_s29 = sadd.s32 1, %s621_s13  ;;  %s75_s30 = sadd.s32 1, %s613_s11 }
  0x11   : > { %p410_p10 = pnand %p409_p9, %p682_p1  ;;  %p40_p12 = scmp.ge.s32.totalorder %s38_s29, 2 }
  0x12   : > { %p82_p13 = scmp.ne.s32.totalorder %s613_s11, %s609_s10  ;;  %p83_p0 = scmp.eq.s32.totalorder %s625_s14, 0 }
  0x13   : > { %412 = dma.hbm_to_vmem [thread:$0]  (!%p410_p10), %s143_s23, 256, %s145_s26, [#allocation3], %s628_s27, %s628_s27, %s629_s28  }
  0x14   : > { %s838_s29 = smov (%p40_p12, %s38_s29), 0  ;;  %p724_p3 = por %p83_p0, %p82_p13 }
  0x15   : > { %p730_p5 = por %p686_p2, %p82_p13  ;;  %s70_s5 = ssub.s32 %s621_s13, %s838_s29 }
  0x16   : > { %p422_p7 = scmp.lt.s32.totalorder %s625_s14, 2  ;;  %p73_p9 = scmp.eq.s32.totalorder %s70_s5, 0 }
  0x17   : > { %s158_s6 = sand.u32 1, %s613_s11   ;;  %s400_s15 = sshll.u32 %s621_s13, 7 }
  0x18   : > { %s389_s7 = sshll.u32 %s158_s6, 7  ;;  %s168_s22 = scalar_lea.hbm %s823_s1, %s400_s15 }
  0x19   : > { %s739_s8 = scalar_select %p73_p9, %s613_s11, %s75_s30  }
  0x1a   : > { %s162_s23 = scalar_lea.vmem [#allocation5], %s389_s7  ;;  %s169_s18 = sshll.u32 %s168_s22, 4  ;;  %s170_s18 = int_to_ptr.hbm [resolvable:$true] %s169_s18 }
  0x1b   : > { %s171_s25 = sshll.u32 %s162_s23, 4  ;;  %p414_p2 = pnand %p422_p7, %p724_p3  ;;  %s172_s25 = int_to_ptr.vmem [resolvable:$true] %s171_s25 }
  0x1c   : > { %s159_s26 = scalar_lea.sflag [#allocation6], %s158_s6  ;;  %183 = sbr.rel (%p705_p8) target bundleno = 243 (0xf3), region = 28 }
  0x1d   : > { %416 = dma.hbm_to_vmem [thread:$0]  (!%p414_p2), %s170_s18, 2048, %s172_s25, %s159_s26, %s628_s27, %s628_s27, %s629_s28  }
  0x21   : > { %592 = dma.done.wait (%p682_p1), [#allocation3], 256  }
  0x22   : > { %594 = vsyncadd (%p682_p1), [#allocation3], 4294967040  ;;  %s757_s30 = sand.u32 1, %s609_s10  }
  0x23   : > { %s394_s3 = sshll.u32 %s757_s30, 7  ;;  %s191_s5 = scalar_lea.sflag [#allocation6], %s757_s30 }
  0x24   : > { %s761_s6 = scalar_lea.vmem [#allocation5], %s394_s3 }
  0x25   : > { %596 = dma.done.wait (%p692_p4), %s191_s5, 2048  }
  0x26   : > { %598 = vsyncadd (%p692_p4), %s191_s5, 4294965248  ;;  %v235_v0 = vld [vmem:[%s761_s6 + $0x70] sm:$0xff]  ;;  %v236_v1 = vld [vmem:[%s761_s6 + $0x78] sm:$0xff]  ;;  %s395_s17 = sshll.u32 %s757_s30, 4  ;;  %s397_s19 = sshll.u32 %s617_s12, 3 }
  0x27   : > { %v245_v2 = vpack.c.bf16 %v236_v1, %v235_v0  ;;  %v233_v3 = vld [vmem:[%s761_s6 + $0x60] sm:$0xff]  ;;  %v234_v4 = vld [vmem:[%s761_s6 + $0x68] sm:$0xff]  ;;  %v231_v6 = vld [vmem:[%s761_s6 + $0x50] sm:$0xff]  ;;  %s276_s28 = scalar_lea.hbm %s824_s2, %s397_s19  ;;  %s215_s7 = scalar_lea.vmem [#allocation7], %s395_s17 }
  0x28   : > { %v244_v5 = vpack.c.bf16 %v234_v4, %v233_v3  ;;  %v232_v7 = vld [vmem:[%s761_s6 + $0x58] sm:$0xff]  ;;  %v229_v9 = vld [vmem:[%s761_s6 + $0x40] sm:$0xff]  ;;  %v230_v10 = vld [vmem:[%s761_s6 + $0x48] sm:$0xff]  ;;  %s277_s15 = sshll.u32 %s215_s7, 4  ;;  %s279_s16 = sshll.u32 %s276_s28, 4  ;;  %s278_s15 = int_to_ptr.vmem [resolvable:$true] %s277_s15  ;;  %s280_s16 = int_to_ptr.hbm [resolvable:$true] %s279_s16 }
  0x29   : > { %246 = vmatpush.bf16.xpose.msra.mxu0 %v245_v2  ;;  %v243_v8 = vpack.c.bf16 %v232_v7, %v231_v6  ;;  %v242_v11 = vpack.c.bf16 %v230_v10, %v229_v9  ;;  %v227_v12 = vld [vmem:[%s761_s6 + $0x30] sm:$0xff]  ;;  %v228_v13 = vld [vmem:[%s761_s6 + $0x38] sm:$0xff]  ;;  %v225_v15 = vld [vmem:[%s761_s6 + $0x20] sm:$0xff]  ;;  %s263_s21 = scalar_lea.sflag [#allocation4], %s757_s30  ;;  %s553_s22 = sshra.s32 %s280_s16, 4  ;;  %s554_s22 = int_to_ptr.hbm [resolvable:$true] %s553_s22 }
  0x2a   : > { %v241_v14 = vpack.c.bf16 %v228_v13, %v227_v12  ;;  %v226_v16 = vld [vmem:[%s761_s6 + $0x28] sm:$0xff]  ;;  %v223_v18 = vld [vmem:[%s761_s6 + $0x10] sm:$0xff]  ;;  %v224_v19 = vld [vmem:[%s761_s6 + $0x18] sm:$0xff]  ;;  %s555_s23 = scalar_lea.hbm %s554_s22, 16  ;;  %s559_s18 = scalar_lea.hbm %s824_s2, 32 }
  0x2b   : > { %v240_v17 = vpack.c.bf16 %v226_v16, %v225_v15  ;;  %v239_v20 = vpack.c.bf16 %v224_v19, %v223_v18  ;;  %v221_v21 = vld [vmem:[%s761_s6] sm:$0xff]  ;;  %v222_v22 = vld [vmem:[%s761_s6 + $0x8] sm:$0xff]  ;;  %v219_v24 = vld [vmem:[#allocation2] sm:$0xff]  ;;  %p556_p1 = scmp.ne.s32.totalorder %s554_s22, %s555_s23  ;;  %p560_p10 = scmp.lt.s32.totalorder %s554_s22, %s824_s2 }
  0x2c   : > { %v238_v23 = vpack.c.bf16 %v222_v22, %v221_v21  ;;  %v220_v25 = vld [vmem:[#allocation2 + $0x8] sm:$0xff]  ;;  %p561_p12 = scmp.lt.s32.totalorder %s559_s18, %s555_s23 }
  0x2d   : > { %v237_v26 = vpack.c.bf16 %v220_v25, %v219_v24  ;;  %p557_p4 = pnand %p556_p1, %p730_p5 }
  0x2e   : > { %p562_p13 = por %p561_p12, %p560_p10 }
  0x2f   : > { %p558_p8 = pneg %p557_p4 }
  0x31   : > { %247 = vmatpush.bf16.xpose.msra.mxu0 %v244_v5  ;;  %p563_p0 = pnand %p562_p13, %p558_p8 }
  0x39   : > { %248 = vmatpush.bf16.xpose.msra.mxu0 %v243_v8 }
  0x41   : > { %249 = vmatpush.bf16.xpose.msra.mxu0 %v242_v11 }
  0x49   : > { %250 = vmatpush.bf16.xpose.msra.mxu0 %v241_v14 }
  0x51   : > { %251 = vmatpush.bf16.xpose.msra.mxu0 %v240_v17 }
  0x59   : > { %252 = vmatpush.bf16.xpose.msra.mxu0 %v239_v20 }
  0x61   : > { %253 = vmatpush.bf16.xpose.msra.mxu0 %v238_v23 }
  0x68   : > { %254 = vmatmul.bf16.vlgmr.msra.gmra.mxu0 %v237_v26 }
  0xe5   : > { %v255_v27 = vpop.f32.mrf.mxu0 }
  0xe6   : > { %260 = vst [vmem:[%s215_s7] sm:$0xff] %v255_v27 }
  0xed   : > { %v257_v28 = vpop.f32.mrf.mxu0 }
  0xee   : > { %261 = vst [vmem:[%s215_s7 + $0x8] sm:$0xff] %v257_v28 }
  0xef   : > { %566 = shalt.err (!%p563_p0)
}
  0xf0   : > { %s630_s30 = smov 128   ;;  %s631_s5 = smov 256  }
  0xf1   : > { %s632_s6 = smov 8  }
  0xf2   : > { %407 = dma.vmem_to_hbm [thread:$0]  (%p730_p5), %s278_s15, 256, %s280_s16, %s263_s21, %s630_s30, %s631_s5, %s632_s6  }
  0xf3 PF: > { %s294_s17 = sand.u32 1, %s605_s9   ;;  %p418_p3 = pnand %p388_p11, %p697_p6 }
  0xf4   : > { %s295_s19 = scalar_lea.sflag [#allocation4], %s294_s17 }
  0xf5   : > { %p419_p7 = pneg %p418_p3 }
  0xf7   : > { %600 = dma.done.wait (%p419_p7), %s295_s19, 256  }
  0xf8   : > { %602 = vsyncadd (%p419_p7), %s295_s19, 4294967040  ;;  %s19_s14 = sadd.s32 1, %s625_s14   ;;  %s832_s9 = smov %s609_s10 }
  0xf9   : > { %p16_p9 = scmp.ge.s32.totalorder %s19_s14, 4   ;;  %s833_s10 = smov %s613_s11 }
  0xfa   : > { %s834_s11 = smov %s739_s8  ;;  %s835_s12 = smov %s621_s13 }
  0xfb   : > { %s836_s13 = smov %s838_s29  ;;  %18 = sbr.rel (!%p16_p9) target bundleno = 7 (0x7), region = 79 }
 0x100   :  { %301 = vsyncpa [#allocation3], 1 }
 0x101   :  { %303 = vsyncpa [#allocation3 + $0x1], 1 }
 0x102   :  { %304 = vsyncpa [#allocation6], 1 }
 0x103   :  { %306 = vsyncpa [#allocation6 + $0x1], 1 }
 0x104   :  { %307 = vsyncpa [#allocation4], 1 }
 0x105   :  { %309 = vsyncpa [#allocation4 + $0x1], 1 }

</bundles_post_ra>
